<compile_context>
chip_gen: v7x
topology: tpu7x:2x2x1
jax: 0.10.0
libtpu: 0.0.40
codegen_flags: <defaults>
</compile_context>

<pallas_src>
import numpy as np
import jax
import jax.numpy as jnp
from jax import lax
from jax.experimental import pallas as pl
from jax.experimental.pallas import tpu as pltpu  # noqa: F401

# ---------------- small synthetic configuration ----------------
SAMPLE_RATE = 16000
WIN   = 256                 # win_length == n_fft
HOP   = 128                 # lane-tile aligned hop
NFFT  = 256
FBINS = NFFT // 2 + 1       # 129 real bins
FPAD  = 256                 # bins zero-padded to a lane-aligned width
NMEL  = 24
NMFCC = 16
T     = 8                   # frames per utterance
L     = WIN + (T - 1) * HOP # raw samples per utterance (1152)
B     = 2                   # batch
H     = 32                  # encoder hidden width
E     = 16                  # embedding dim
D     = 16                  # PLDA (post-W) dim
S     = 4                   # enrolled speakers
SQRT_D = float(np.sqrt(D))


# ====================== fused Pallas kernel ======================

def discriminator_kernel(x_ref, dft_ref, mel_ref, dct_ref,
                         w1_ref, b1_ref, w2_ref, b2_ref, w3_ref, b3_ref,
                         wt_ref, wtb_ref, qp_ref, ue_ref, eq_ref,
                         out_ref):
    Bn = x_ref.shape[0]
    BT = Bn * T

    # ---------- framing (reshape + two lane-aligned slices + one lane concat) ----------
    x = x_ref[...]                                                      # (B, L)
    chunks = x.reshape(Bn, L // HOP, HOP)                               # (B, 9, 128)
    frames = jnp.concatenate([chunks[:, :T, :], chunks[:, 1:T + 1, :]],
                             axis=-1)                                   # (B, T, WIN)
    f = frames.reshape(BT, WIN)                                         # (B*T, WIN)

    # ---------- MFCC: one wide bf16 DFT matmul (window pre-folded, cos|sin concatenated) ----------
    spec = jnp.dot(f.astype(jnp.bfloat16), dft_ref[...],
                   preferred_element_type=jnp.float32)                  # (B*T, 2*FPAD)
    re = spec[:, :FPAD]
    im = spec[:, FPAD:]
    power = re * re + im * im                                           # (B*T, FPAD)  f32
    mel = jnp.dot(power, mel_ref[...], preferred_element_type=jnp.float32)   # (B*T, NMEL)
    logmel = jnp.log(mel + 1e-6)
    mfcc = jnp.dot(logmel, dct_ref[...], preferred_element_type=jnp.float32)  # (B*T, NMFCC)

    # cepstral mean normalization, per utterance
    # TODO(synk): original MFCC uses a sliding cmn_window; full-utterance CMN here.
    mfcc3 = mfcc.reshape(Bn, T, NMFCC)
    mfcc3 = mfcc3 - jnp.mean(mfcc3, axis=1, keepdims=True)
    feat = mfcc3.reshape(BT, NMFCC)                                     # (B*T, NMFCC)

    # ---------- encoder: frame-level dense layers + stats pooling + fused segment layer ----------
    # TODO(synk): real Xvector uses temporal-context TDNN conv1d layers; modeled here as
    # context-1 frame-level dense layers + stats pooling.
    h1 = jnp.maximum(
        jnp.dot(feat, w1_ref[...], preferred_element_type=jnp.float32) + b1_ref[...], 0.0)
    h2 = jnp.maximum(
        jnp.dot(h1, w2_ref[...], preferred_element_type=jnp.float32) + b2_ref[...], 0.0)
    h2_3 = h2.reshape(Bn, T, H)
    mu3 = jnp.mean(h2_3, axis=1, keepdims=True)                         # (B, 1, H)
    diff = h2_3 - mu3
    var3 = jnp.mean(diff * diff, axis=1, keepdims=True)                 # two-pass variance
    mu = mu3.reshape(Bn, H)                                             # (B, H)
    std = jnp.sqrt(var3 + 1e-6).reshape(Bn, H)                          # (B, H)
    stats = jnp.concatenate([mu, std], axis=1)                          # (B, 2H)
    emb = (jnp.dot(stats, w3_ref[...], preferred_element_type=jnp.float32)
           + b3_ref[...])                                               # (B, E)

    # ---------- GPLDA scoring (test side only; enrolled side precomputed at build time) ----------
    # u_t = (emb - miu) @ W^T  ==  emb @ W^T + (-miu @ W^T), then length-norm to sqrt(D)
    u = jnp.dot(emb, wt_ref[...], preferred_element_type=jnp.float32) + wtb_ref[...]  # (B, D)
    nrm = jnp.sqrt(jnp.sum(u * u, axis=-1, keepdims=True)) + 1e-8
    ut = u * (SQRT_D / nrm)                                             # (B, D)

    # fused [Q | P] matmul, then split
    utqp = jnp.dot(ut, qp_ref[...], preferred_element_type=jnp.float32)  # (B, 2D)
    tq = jnp.sum(utqp[:, :D] * ut, axis=-1, keepdims=True)              # (B, 1)  test quadratic
    utp = utqp[:, D:]                                                   # (B, D)

    # cross bilinear term: 2 * (ut P) @ ue^T, plus precomputed enrolled quadratic (1, S)
    cross = 2.0 * lax.dot_general(utp, ue_ref[...], (((1,), (1,)), ((), ())),
                                  preferred_element_type=jnp.float32)   # (B, S)

    # output is already transposed: score(enrolled, test).T -> (B, S)
    out_ref[...] = tq + cross + eq_ref[...]


# ====================== pallas_call wrapper ======================

def discriminator_forward(x, p):
    # x: (B, 1, L) raw audio (NCL) -> squeeze channel dim like x.squeeze(dim=1)
    xs = jnp.squeeze(x, axis=1).astype(jnp.float32)                     # (B, L)
    Bn = xs.shape[0]
    cost = pl.CostEstimate(flops=4_500_000, transcendentals=512,
                           bytes_accessed=320_000)
    return pl.pallas_call(
        discriminator_kernel,
        out_shape=jax.ShapeDtypeStruct((Bn, S), jnp.float32),
        cost_estimate=cost,
    )(xs, p["dftM"], p["melW"], p["dctM"],
      p["w1"], p["b1"], p["w2"], p["b2"], p["w3"], p["b3"],
      p["WT"], p["WTb"], p["QP"], p["ue"], p["eq"])


# ====================== parameter synthesis (deterministic) ======================

def mel_filterbank(n_fft, n_mels, sr):
    def hz_to_mel(f): return 2595.0 * np.log10(1.0 + f / 700.0)
    def mel_to_hz(m): return 700.0 * (10.0 ** (m / 2595.0) - 1.0)
    mels = np.linspace(hz_to_mel(0.0), hz_to_mel(sr / 2.0), n_mels + 2)
    bins = np.floor((n_fft + 1) * mel_to_hz(mels) / sr).astype(int)
    fb = np.zeros((n_fft // 2 + 1, n_mels), dtype=np.float32)
    for m in range(1, n_mels + 1):
        l, c, r = bins[m - 1], bins[m], bins[m + 1]
        for k in range(l, c):
            if c > l:
                fb[k, m - 1] = (k - l) / (c - l)
        for k in range(c, r):
            if r > c:
                fb[k, m - 1] = (r - k) / (r - c)
    return fb


def dct_matrix(n_mels, n_mfcc):
    n = np.arange(n_mels)[:, None]
    k = np.arange(n_mfcc)[None, :]
    m = np.sqrt(2.0 / n_mels) * np.cos(np.pi / n_mels * (n + 0.5) * k)
    m[:, 0] *= 1.0 / np.sqrt(2.0)
    return m.astype(np.float32)                                         # (NMEL, NMFCC)


def build_params():
    key = jax.random.PRNGKey(0)
    ks = jax.random.split(key, 16)

    # ---- MFCC fixed transforms ----
    # DFT bins zero-padded 129 -> 256, cos|sin concatenated, Hann window folded in,
    # stored as bf16 (MXU-native; f32 accumulation happens in the kernel).
    n = np.arange(WIN)[:, None].astype(np.float64)
    k = np.arange(FBINS)[None, :].astype(np.float64)
    cosM = np.zeros((WIN, FPAD), dtype=np.float64)
    sinM = np.zeros((WIN, FPAD), dtype=np.float64)
    cosM[:, :FBINS] = np.cos(2.0 * np.pi * n * k / NFFT)
    sinM[:, :FBINS] = -np.sin(2.0 * np.pi * n * k / NFFT)
    window = 0.5 - 0.5 * np.cos(2.0 * np.pi * np.arange(WIN) / WIN)     # Hann
    dftM = (window[:, None] * np.concatenate([cosM, sinM], axis=1))     # (WIN, 2*FPAD)
    dftM = jnp.asarray(dftM, dtype=jnp.bfloat16)
    melW = np.zeros((FPAD, NMEL), dtype=np.float32)
    melW[:FBINS, :] = mel_filterbank(NFFT, NMEL, SAMPLE_RATE)           # padded rows are zero
    dctM = dct_matrix(NMEL, NMFCC)

    # ---- encoder (synthetic "checkpoint") ----
    w1 = 0.2 * jax.random.normal(ks[0], (NMFCC, H), jnp.float32)
    b1 = 0.1 * jax.random.normal(ks[1], (1, H), jnp.float32)
    w2 = 0.2 * jax.random.normal(ks[2], (H, H), jnp.float32)
    b2 = 0.1 * jax.random.normal(ks[3], (1, H), jnp.float32)
    w3m = 0.2 * jax.random.normal(ks[4], (H, E), jnp.float32)
    w3s = 0.2 * jax.random.normal(ks[5], (H, E), jnp.float32)
    b3 = 0.1 * jax.random.normal(ks[6], (1, E), jnp.float32)
    w3 = jnp.concatenate([w3m, w3s], axis=0)                            # (2H, E) prestacked

    # ---- GPLDA (synthetic phi / sigma / W / miu) ----
    a = 0.3 * jax.random.normal(ks[7], (D, D), jnp.float32)
    phi = a @ a.T + 0.5 * jnp.eye(D, dtype=jnp.float32)
    b = 0.3 * jax.random.normal(ks[8], (D, D), jnp.float32)
    sigma = b @ b.T + jnp.eye(D, dtype=jnp.float32)
    W = 0.3 * jax.random.normal(ks[9], (D, E), jnp.float32)
    miu = 0.1 * jax.random.normal(ks[10], (1, E), jnp.float32)

    # precompute PLDA LLR matrices (glue: small matrix inverses)
    sig_tot = phi + sigma
    sig_tot_inv = jnp.linalg.inv(sig_tot)
    lam = jnp.linalg.inv(sig_tot - phi @ sig_tot_inv @ phi)
    Q = sig_tot_inv - lam
    P = sig_tot_inv @ phi @ lam
    Q = 0.5 * (Q + Q.T)
    P = 0.5 * (P + P.T)
    QP = jnp.concatenate([Q, P], axis=1)                                # (D, 2D) fused

    WT = W.T                                                            # (E, D)
    WTb = -(miu @ WT)                                                   # (1, D)  folded -miu@W^T

    # enrolled speaker embeddings (result of Discriminator.enroll, synthesized),
    # with the enrolled-side PLDA work hoisted to build time:
    enrolled = jax.random.normal(ks[11], (S, E), jnp.float32)
    ue_raw = (enrolled - miu) @ WT                                      # (S, D)
    ue_nrm = jnp.sqrt(jnp.sum(ue_raw * ue_raw, axis=-1, keepdims=True)) + 1e-8
    ue = ue_raw * (SQRT_D / ue_nrm)                                     # (S, D) length-normed
    eq = jnp.sum((ue @ Q) * ue, axis=-1).reshape(1, S)                  # (1, S) enrolled quadratic

    return dict(
        dftM=dftM, melW=jnp.asarray(melW), dctM=jnp.asarray(dctM),
        w1=w1, b1=b1, w2=w2, b2=b2, w3=w3, b3=b3,
        WT=WT, WTb=WTb, QP=QP, ue=ue, eq=eq,
    )


if __name__ == "__main__":
    params = build_params()
    x = 0.1 * jax.random.normal(jax.random.PRNGKey(0), (B, 1, L), jnp.float32)
    scores = discriminator_forward(x, params)
    scores = jax.block_until_ready(scores)
    assert scores.shape == (B, S) and scores.dtype == jnp.float32
    assert bool(jnp.all(jnp.isfinite(scores)))
    print("KERNEL_OK")
</pallas_src>

<mosaic_0001>
module attributes {stable_mosaic.version = 11 : i64} {
  func.func @discriminator_kernel(%arg0: memref<2x1152xf32, #tpu.memory_space<vmem>>, %arg1: memref<256x512xbf16, #tpu.memory_space<vmem>>, %arg2: memref<256x24xf32, #tpu.memory_space<vmem>>, %arg3: memref<24x16xf32, #tpu.memory_space<vmem>>, %arg4: memref<16x32xf32, #tpu.memory_space<vmem>>, %arg5: memref<1x32xf32, #tpu.memory_space<vmem>>, %arg6: memref<32x32xf32, #tpu.memory_space<vmem>>, %arg7: memref<1x32xf32, #tpu.memory_space<vmem>>, %arg8: memref<64x16xf32, #tpu.memory_space<vmem>>, %arg9: memref<1x16xf32, #tpu.memory_space<vmem>>, %arg10: memref<16x16xf32, #tpu.memory_space<vmem>>, %arg11: memref<1x16xf32, #tpu.memory_space<vmem>>, %arg12: memref<16x32xf32, #tpu.memory_space<vmem>>, %arg13: memref<4x16xf32, #tpu.memory_space<vmem>>, %arg14: memref<1x4xf32, #tpu.memory_space<vmem>>, %arg15: memref<2x4xf32, #tpu.memory_space<vmem>>) attributes {dimension_semantics = [], scalar_prefetch = 0 : i64, scratch_operands = 0 : i64, tpu.core_type = #tpu.core_type<tc>} {
    %c0 = arith.constant 0 : index
    %c0_0 = arith.constant 0 : index
    %0 = vector.load %arg0[%c0, %c0_0] : memref<2x1152xf32, #tpu.memory_space<vmem>>, vector<2x1152xf32>
    %1 = vector.shape_cast %0 : vector<2x1152xf32> to vector<2x9x128xf32>
    %2 = vector.extract_strided_slice %1 {offsets = [0, 0, 0], sizes = [2, 8, 128], strides = [1, 1, 1]} : vector<2x9x128xf32> to vector<2x8x128xf32>
    %3 = vector.extract_strided_slice %1 {offsets = [0, 1, 0], sizes = [2, 8, 128], strides = [1, 1, 1]} : vector<2x9x128xf32> to vector<2x8x128xf32>
    %4 = tpu.concatenate %2, %3 in 2 : vector<2x8x128xf32>, vector<2x8x128xf32> -> vector<2x8x256xf32>
    %5 = vector.shape_cast %4 : vector<2x8x256xf32> to vector<16x256xf32>
    %6 = arith.truncf %5 : vector<16x256xf32> to vector<16x256xbf16>
    %c0_1 = arith.constant 0 : index
    %c0_2 = arith.constant 0 : index
    %7 = vector.load %arg1[%c0_1, %c0_2] : memref<256x512xbf16, #tpu.memory_space<vmem>>, vector<256x512xbf16>
    %cst = arith.constant dense<0.000000e+00> : vector<16x512xf32>
    %8 = tpu.matmul %6, %7, %cst {dimension_numbers = #tpu.dot_dimension_numbers<[1], [0], [0], [1], [0, 0, 1, 1], [], []>} : vector<16x256xbf16>, vector<256x512xbf16>, vector<16x512xf32> -> vector<16x512xf32>
    %9 = vector.extract_strided_slice %8 {offsets = [0, 0], sizes = [16, 256], strides = [1, 1]} : vector<16x512xf32> to vector<16x256xf32>
    %10 = vector.extract_strided_slice %8 {offsets = [0, 256], sizes = [16, 256], strides = [1, 1]} : vector<16x512xf32> to vector<16x256xf32>
    %11 = arith.mulf %9, %9 : vector<16x256xf32>
    %12 = arith.mulf %10, %10 : vector<16x256xf32>
    %13 = arith.addf %11, %12 : vector<16x256xf32>
    %c0_3 = arith.constant 0 : index
    %c0_4 = arith.constant 0 : index
    %14 = vector.load %arg2[%c0_3, %c0_4] : memref<256x24xf32, #tpu.memory_space<vmem>>, vector<256x24xf32>
    %cst_5 = arith.constant dense<0.000000e+00> : vector<16x24xf32>
    %15 = tpu.matmul %13, %14, %cst_5 {dimension_numbers = #tpu.dot_dimension_numbers<[1], [0], [0], [1], [0, 0, 1, 1], [], []>} : vector<16x256xf32>, vector<256x24xf32>, vector<16x24xf32> -> vector<16x24xf32>
    %cst_6 = arith.constant 9.99999997E-7 : f32
    %16 = vector.broadcast %cst_6 : f32 to vector<16x24xf32>
    %17 = arith.addf %15, %16 : vector<16x24xf32>
    %18 = math.log %17 : vector<16x24xf32>
    %c0_7 = arith.constant 0 : index
    %c0_8 = arith.constant 0 : index
    %19 = vector.load %arg3[%c0_7, %c0_8] : memref<24x16xf32, #tpu.memory_space<vmem>>, vector<24x16xf32>
    %cst_9 = arith.constant dense<0.000000e+00> : vector<16x16xf32>
    %20 = tpu.matmul %18, %19, %cst_9 {dimension_numbers = #tpu.dot_dimension_numbers<[1], [0], [0], [1], [0, 0, 1, 1], [], []>} : vector<16x24xf32>, vector<24x16xf32>, vector<16x16xf32> -> vector<16x16xf32>
    %21 = vector.shape_cast %20 : vector<16x16xf32> to vector<2x8x16xf32>
    %cst_10 = arith.constant dense<0.000000e+00> : vector<2x16xf32>
    %22 = vector.multi_reduction <add>, %21, %cst_10 [1] : vector<2x8x16xf32> to vector<2x16xf32>
    %23 = vector.shape_cast %22 : vector<2x16xf32> to vector<2x1x16xf32>
    %cst_11 = arith.constant 8.000000e+00 : f32
    %24 = vector.broadcast %cst_11 : f32 to vector<2x1x16xf32>
    %25 = arith.divf %23, %24 : vector<2x1x16xf32>
    %26 = vector.broadcast %25 : vector<2x1x16xf32> to vector<2x8x16xf32>
    %27 = arith.subf %21, %26 : vector<2x8x16xf32>
    %28 = vector.shape_cast %27 : vector<2x8x16xf32> to vector<16x16xf32>
    %c0_12 = arith.constant 0 : index
    %c0_13 = arith.constant 0 : index
    %29 = vector.load %arg4[%c0_12, %c0_13] : memref<16x32xf32, #tpu.memory_space<vmem>>, vector<16x32xf32>
    %cst_14 = arith.constant dense<0.000000e+00> : vector<16x32xf32>
    %30 = tpu.matmul %28, %29, %cst_14 {dimension_numbers = #tpu.dot_dimension_numbers<[1], [0], [0], [1], [0, 0, 1, 1], [], []>} : vector<16x16xf32>, vector<16x32xf32>, vector<16x32xf32> -> vector<16x32xf32>
    %c0_15 = arith.constant 0 : index
    %c0_16 = arith.constant 0 : index
    %31 = vector.load %arg5[%c0_15, %c0_16] : memref<1x32xf32, #tpu.memory_space<vmem>>, vector<1x32xf32>
    %32 = vector.broadcast %31 : vector<1x32xf32> to vector<16x32xf32>
    %33 = arith.addf %30, %32 : vector<16x32xf32>
    %cst_17 = arith.constant 0.000000e+00 : f32
    %34 = vector.broadcast %cst_17 : f32 to vector<16x32xf32>
    %35 = arith.maximumf %33, %34 : vector<16x32xf32>
    %c0_18 = arith.constant 0 : index
    %c0_19 = arith.constant 0 : index
    %36 = vector.load %arg6[%c0_18, %c0_19] : memref<32x32xf32, #tpu.memory_space<vmem>>, vector<32x32xf32>
    %cst_20 = arith.constant dense<0.000000e+00> : vector<16x32xf32>
    %37 = tpu.matmul %35, %36, %cst_20 {dimension_numbers = #tpu.dot_dimension_numbers<[1], [0], [0], [1], [0, 0, 1, 1], [], []>} : vector<16x32xf32>, vector<32x32xf32>, vector<16x32xf32> -> vector<16x32xf32>
    %c0_21 = arith.constant 0 : index
    %c0_22 = arith.constant 0 : index
    %38 = vector.load %arg7[%c0_21, %c0_22] : memref<1x32xf32, #tpu.memory_space<vmem>>, vector<1x32xf32>
    %39 = vector.broadcast %38 : vector<1x32xf32> to vector<16x32xf32>
    %40 = arith.addf %37, %39 : vector<16x32xf32>
    %cst_23 = arith.constant 0.000000e+00 : f32
    %41 = vector.broadcast %cst_23 : f32 to vector<16x32xf32>
    %42 = arith.maximumf %40, %41 : vector<16x32xf32>
    %43 = vector.shape_cast %42 : vector<16x32xf32> to vector<2x8x32xf32>
    %cst_24 = arith.constant dense<0.000000e+00> : vector<2x32xf32>
    %44 = vector.multi_reduction <add>, %43, %cst_24 [1] : vector<2x8x32xf32> to vector<2x32xf32>
    %45 = vector.shape_cast %44 : vector<2x32xf32> to vector<2x1x32xf32>
    %cst_25 = arith.constant 8.000000e+00 : f32
    %46 = vector.broadcast %cst_25 : f32 to vector<2x1x32xf32>
    %47 = arith.divf %45, %46 : vector<2x1x32xf32>
    %48 = vector.broadcast %47 : vector<2x1x32xf32> to vector<2x8x32xf32>
    %49 = arith.subf %43, %48 : vector<2x8x32xf32>
    %50 = arith.mulf %49, %49 : vector<2x8x32xf32>
    %cst_26 = arith.constant dense<0.000000e+00> : vector<2x32xf32>
    %51 = vector.multi_reduction <add>, %50, %cst_26 [1] : vector<2x8x32xf32> to vector<2x32xf32>
    %52 = vector.shape_cast %51 : vector<2x32xf32> to vector<2x1x32xf32>
    %cst_27 = arith.constant 8.000000e+00 : f32
    %53 = vector.broadcast %cst_27 : f32 to vector<2x1x32xf32>
    %54 = arith.divf %52, %53 : vector<2x1x32xf32>
    %55 = vector.shape_cast %47 : vector<2x1x32xf32> to vector<2x32xf32>
    %cst_28 = arith.constant 9.99999997E-7 : f32
    %56 = vector.broadcast %cst_28 : f32 to vector<2x1x32xf32>
    %57 = arith.addf %54, %56 : vector<2x1x32xf32>
    %58 = math.sqrt %57 : vector<2x1x32xf32>
    %59 = vector.shape_cast %58 : vector<2x1x32xf32> to vector<2x32xf32>
    %60 = tpu.concatenate %55, %59 in 1 : vector<2x32xf32>, vector<2x32xf32> -> vector<2x64xf32>
    %c0_29 = arith.constant 0 : index
    %c0_30 = arith.constant 0 : index
    %61 = vector.load %arg8[%c0_29, %c0_30] : memref<64x16xf32, #tpu.memory_space<vmem>>, vector<64x16xf32>
    %cst_31 = arith.constant dense<0.000000e+00> : vector<2x16xf32>
    %62 = tpu.matmul %60, %61, %cst_31 {dimension_numbers = #tpu.dot_dimension_numbers<[1], [0], [0], [1], [0, 0, 1, 1], [], []>} : vector<2x64xf32>, vector<64x16xf32>, vector<2x16xf32> -> vector<2x16xf32>
    %c0_32 = arith.constant 0 : index
    %c0_33 = arith.constant 0 : index
    %63 = vector.load %arg9[%c0_32, %c0_33] : memref<1x16xf32, #tpu.memory_space<vmem>>, vector<1x16xf32>
    %64 = vector.broadcast %63 : vector<1x16xf32> to vector<2x16xf32>
    %65 = arith.addf %62, %64 : vector<2x16xf32>
    %c0_34 = arith.constant 0 : index
    %c0_35 = arith.constant 0 : index
    %66 = vector.load %arg10[%c0_34, %c0_35] : memref<16x16xf32, #tpu.memory_space<vmem>>, vector<16x16xf32>
    %cst_36 = arith.constant dense<0.000000e+00> : vector<2x16xf32>
    %67 = tpu.matmul %65, %66, %cst_36 {dimension_numbers = #tpu.dot_dimension_numbers<[1], [0], [0], [1], [0, 0, 1, 1], [], []>} : vector<2x16xf32>, vector<16x16xf32>, vector<2x16xf32> -> vector<2x16xf32>
    %c0_37 = arith.constant 0 : index
    %c0_38 = arith.constant 0 : index
    %68 = vector.load %arg11[%c0_37, %c0_38] : memref<1x16xf32, #tpu.memory_space<vmem>>, vector<1x16xf32>
    %69 = vector.broadcast %68 : vector<1x16xf32> to vector<2x16xf32>
    %70 = arith.addf %67, %69 : vector<2x16xf32>
    %71 = arith.mulf %70, %70 : vector<2x16xf32>
    %cst_39 = arith.constant dense<0.000000e+00> : vector<2xf32>
    %72 = vector.multi_reduction <add>, %71, %cst_39 [1] : vector<2x16xf32> to vector<2xf32>
    %73 = vector.shape_cast %72 : vector<2xf32> to vector<2x1xf32>
    %74 = math.sqrt %73 : vector<2x1xf32>
    %cst_40 = arith.constant 9.99999993E-9 : f32
    %75 = vector.broadcast %cst_40 : f32 to vector<2x1xf32>
    %76 = arith.addf %74, %75 : vector<2x1xf32>
    %cst_41 = arith.constant 4.000000e+00 : f32
    %77 = vector.broadcast %cst_41 : f32 to vector<2x1xf32>
    %78 = arith.divf %77, %76 : vector<2x1xf32>
    %79 = vector.broadcast %78 : vector<2x1xf32> to vector<2x16xf32>
    %80 = arith.mulf %70, %79 : vector<2x16xf32>
    %c0_42 = arith.constant 0 : index
    %c0_43 = arith.constant 0 : index
    %81 = vector.load %arg12[%c0_42, %c0_43] : memref<16x32xf32, #tpu.memory_space<vmem>>, vector<16x32xf32>
    %cst_44 = arith.constant dense<0.000000e+00> : vector<2x32xf32>
    %82 = tpu.matmul %80, %81, %cst_44 {dimension_numbers = #tpu.dot_dimension_numbers<[1], [0], [0], [1], [0, 0, 1, 1], [], []>} : vector<2x16xf32>, vector<16x32xf32>, vector<2x32xf32> -> vector<2x32xf32>
    %83 = vector.extract_strided_slice %82 {offsets = [0, 0], sizes = [2, 16], strides = [1, 1]} : vector<2x32xf32> to vector<2x16xf32>
    %84 = arith.mulf %83, %80 : vector<2x16xf32>
    %cst_45 = arith.constant dense<0.000000e+00> : vector<2xf32>
    %85 = vector.multi_reduction <add>, %84, %cst_45 [1] : vector<2x16xf32> to vector<2xf32>
    %86 = vector.shape_cast %85 : vector<2xf32> to vector<2x1xf32>
    %87 = vector.extract_strided_slice %82 {offsets = [0, 16], sizes = [2, 16], strides = [1, 1]} : vector<2x32xf32> to vector<2x16xf32>
    %c0_46 = arith.constant 0 : index
    %c0_47 = arith.constant 0 : index
    %88 = vector.load %arg13[%c0_46, %c0_47] : memref<4x16xf32, #tpu.memory_space<vmem>>, vector<4x16xf32>
    %cst_48 = arith.constant dense<0.000000e+00> : vector<2x4xf32>
    %89 = tpu.matmul %87, %88, %cst_48 {dimension_numbers = #tpu.dot_dimension_numbers<[1], [1], [0], [0], [0, 0, 1, 0], [], []>} : vector<2x16xf32>, vector<4x16xf32>, vector<2x4xf32> -> vector<2x4xf32>
    %cst_49 = arith.constant 2.000000e+00 : f32
    %90 = vector.broadcast %cst_49 : f32 to vector<2x4xf32>
    %91 = arith.mulf %90, %89 : vector<2x4xf32>
    %92 = vector.broadcast %86 : vector<2x1xf32> to vector<2x4xf32>
    %93 = arith.addf %92, %91 : vector<2x4xf32>
    %c0_50 = arith.constant 0 : index
    %c0_51 = arith.constant 0 : index
    %94 = vector.load %arg14[%c0_50, %c0_51] : memref<1x4xf32, #tpu.memory_space<vmem>>, vector<1x4xf32>
    %95 = vector.broadcast %94 : vector<1x4xf32> to vector<2x4xf32>
    %96 = arith.addf %93, %95 : vector<2x4xf32>
    %c0_52 = arith.constant 0 : index
    %c0_53 = arith.constant 0 : index
    %97 = vector.load %arg15[%c0_52, %c0_53] : memref<2x4xf32, #tpu.memory_space<vmem>>, vector<2x4xf32>
    tpu.vector_store %arg15[%c0_52, %c0_53], %96 {strides = array<i32>} : memref<2x4xf32, #tpu.memory_space<vmem>>, vector<2x4xf32>,
    return
  }
}

</mosaic_0001>

<bundles_post_ra>
// kernel: tpu_custom_call.1
= control target key start
LH: loop header
LB: loop body
LE: loop exit
PB: predicated region body
PF: predicated region fallthrough
CT: control target
= control target key end

     0   :  { %20 = vsyncpa [#allocation3], 0  ;;  %s2299_s0 = inlined_call_operand.vmem [shape: f32[2,1152], index: 0, kind: input, shape index: {}]   ;;  %s2300_s1 = inlined_call_operand.hbm [shape: bf16[256,512], index: 1, kind: input, shape index: {}]   ;;  %s2301_s2 = inlined_call_operand.vmem [shape: f32[256,24], index: 2, kind: input, shape index: {}]   ;;  %s2302_s3 = inlined_call_operand.vmem [shape: f32[24,16], index: 3, kind: input, shape index: {}]   ;;  %s2303_s4 = inlined_call_operand.vmem [shape: f32[16,32], index: 4, kind: input, shape index: {}]   ;;  %s2304_s5 = inlined_call_operand.vmem [shape: f32[1,32], index: 5, kind: input, shape index: {}]   ;;  %s2305_s6 = inlined_call_operand.vmem [shape: f32[32,32], index: 6, kind: input, shape index: {}]   ;;  %s2306_s7 = inlined_call_operand.vmem [shape: f32[1,32], index: 7, kind: input, shape index: {}]   ;;  %s2307_s8 = inlined_call_operand.vmem [shape: f32[64,16], index: 8, kind: input, shape index: {}]   ;;  %s2308_s9 = inlined_call_operand.vmem [shape: f32[1,16], index: 9, kind: input, shape index: {}]   ;;  %s2309_s10 = inlined_call_operand.vmem [shape: f32[16,16], index: 10, kind: input, shape index: {}]   ;;  %s2310_s11 = inlined_call_operand.vmem [shape: f32[1,16], index: 11, kind: input, shape index: {}]   ;;  %s2311_s12 = inlined_call_operand.vmem [shape: f32[16,32], index: 12, kind: input, shape index: {}]   ;;  %s2312_s13 = inlined_call_operand.vmem [shape: f32[4,16], index: 13, kind: input, shape index: {}]   ;;  %s2313_s14 = inlined_call_operand.vmem [shape: f32[1,4], index: 14, kind: input, shape index: {}]   ;;  %s2314_s15 = inlined_call_operand.hbm [shape: f32[2,4], index: 15, kind: output, shape index: {}]  }
   0x1   :  { %21 = vsyncpa [#allocation4], 0  ;;  %s1969_s18 = smov [#allocation2]   ;;  %s1921_s22 = scalar_lea.hbm %s2300_s1, 8192 }
   0x2   :  { %s29_s19 = sshll.u32 %s1969_s18, 4  ;;  %p1922_p0 = scmp.ne.s32.totalorder %s2300_s1, %s1921_s22  ;;  %s30_s19 = int_to_ptr.vmem [resolvable:$true] %s29_s19 }
   0x3   :  { %p1925_p1 = scmp.lt.u32.totalorder %s1921_s22, %s2300_s1 }
   0x5   :  { %p1927_p2 = pnand %p1925_p1, %p1922_p0 }
   0x7   :  { %1930 = shalt.err (!%p1927_p2)
}
   0x8   :  { %s1931_s27 = scalar_lea.vmem %s30_s19, 8192  ;;  %p1936_p4 = scmp.lt.s32.totalorder %s30_s19, %s30_s19 }
   0x9   :  { %p1932_p3 = scmp.ne.s32.totalorder %s30_s19, %s1931_s27  ;;  %p1937_p5 = scmp.lt.s32.totalorder %s1931_s27, %s1931_s27 }
   0xb   :  { %p1938_p6 = por %p1937_p5, %p1936_p4 }
   0xd   :  { %p1939_p7 = pnand %p1938_p6, %p1932_p3 }
   0xf   :  { %1942 = shalt.err (!%p1939_p7)
}
  0x10   :  { %s1970_s28 = smov 256   ;;  %s1971_s29 = smov 16  }
  0x11   :  { %35 = dma.hbm_to_vmem [thread:$0]  %s2300_s1, 8192, %s30_s19, [#allocation3], %s1970_s28, %s1970_s28, %s1971_s29  }
  0x12   :  { %1965 = dma.done.wait [#allocation3], 8192  }
  0x13   :  { %1966 = vsyncadd [#allocation3], 4294959104  ;;  %v1813_v0 = vld [vmem:[#allocation2 + $0x4] ss:$16 sps:$4 sm:$0xff]   ;;  %v1815_v1 = vld [vmem:[#allocation2 + $0xc] ss:$16 sps:$4 sm:$0xff]   ;;  %v85_v41 = vlaneseq }
  0x14   :  { %581 = vmatprep.subr.bf16.mxu0 %v1813_v0  ;;  %v1817_v2 = vld [vmem:[#allocation2] ss:$16 sps:$4 sm:$0xff]   ;;  %v1818_v3 = vld [vmem:[#allocation2 + $0x8] ss:$16 sps:$4 sm:$0xff]   ;;  %624 = vmatprep.subr.bf16.mxu1 %v1815_v1  ;;  %v1819_v4 = vld [vmem:[#allocation2 + $0x24] ss:$16 sps:$4 sm:$0xff]  }
  0x15   :  { %582 = vmatpush1.bf16.msra.mxu0 %v1817_v2  ;;  %625 = vmatpush1.bf16.msra.mxu1 %v1818_v3  ;;  %v1821_v5 = vld [vmem:[#allocation2 + $0x2c] ss:$16 sps:$4 sm:$0xff]   ;;  %v1823_v6 = vld [vmem:[#allocation2 + $0x20] ss:$16 sps:$4 sm:$0xff]   ;;  %v1824_v7 = vld [vmem:[#allocation2 + $0x28] ss:$16 sps:$4 sm:$0xff]  }
  0x16   :  { %583 = vmatprep.subr.bf16.mxu0 %v1819_v4  ;;  %626 = vmatprep.subr.bf16.mxu1 %v1821_v5  ;;  %v1825_v8 = vld [vmem:[#allocation2 + $0x44] ss:$16 sps:$4 sm:$0xff]   ;;  %v1827_v9 = vld [vmem:[#allocation2 + $0x4c] ss:$16 sps:$4 sm:$0xff]   ;;  %v1829_v10 = vld [vmem:[#allocation2 + $0x40] ss:$16 sps:$4 sm:$0xff]  }
  0x17   :  { %v1830_v11 = vld [vmem:[#allocation2 + $0x48] ss:$16 sps:$4 sm:$0xff]   ;;  %v1831_v12 = vld [vmem:[#allocation2 + $0x64] ss:$16 sps:$4 sm:$0xff]   ;;  %v1833_v13 = vld [vmem:[#allocation2 + $0x6c] ss:$16 sps:$4 sm:$0xff]  }
  0x18   :  { %v1835_v14 = vld [vmem:[#allocation2 + $0x60] ss:$16 sps:$4 sm:$0xff]   ;;  %v1836_v15 = vld [vmem:[#allocation2 + $0x68] ss:$16 sps:$4 sm:$0xff]   ;;  %v1837_v16 = vld [vmem:[#allocation2 + $0x84] ss:$16 sps:$4 sm:$0xff]  }
  0x19   :  { %584 = vmatpush1.bf16.msra.mxu0 %v1823_v6  ;;  %627 = vmatpush1.bf16.msra.mxu1 %v1824_v7  ;;  %v1839_v17 = vld [vmem:[#allocation2 + $0x8c] ss:$16 sps:$4 sm:$0xff]   ;;  %v1841_v18 = vld [vmem:[#allocation2 + $0x80] ss:$16 sps:$4 sm:$0xff]   ;;  %v1842_v19 = vld [vmem:[#allocation2 + $0x88] ss:$16 sps:$4 sm:$0xff]  }
  0x1a   :  { %585 = vmatprep.subr.bf16.mxu0 %v1825_v8  ;;  %628 = vmatprep.subr.bf16.mxu1 %v1827_v9  ;;  %v1843_v20 = vld [vmem:[#allocation2 + $0xa4] ss:$16 sps:$4 sm:$0xff]   ;;  %v1845_v21 = vld [vmem:[#allocation2 + $0xac] ss:$16 sps:$4 sm:$0xff]   ;;  %v1847_v22 = vld [vmem:[#allocation2 + $0xa0] ss:$16 sps:$4 sm:$0xff]  }
  0x1b   :  { %v1848_v23 = vld [vmem:[#allocation2 + $0xa8] ss:$16 sps:$4 sm:$0xff]   ;;  %v1849_v24 = vld [vmem:[#allocation2 + $0xc4] ss:$16 sps:$4 sm:$0xff]   ;;  %v1851_v25 = vld [vmem:[#allocation2 + $0xcc] ss:$16 sps:$4 sm:$0xff]  }
  0x1c   :  { %v1853_v26 = vld [vmem:[#allocation2 + $0xc0] ss:$16 sps:$4 sm:$0xff]   ;;  %v1854_v27 = vld [vmem:[#allocation2 + $0xc8] ss:$16 sps:$4 sm:$0xff]   ;;  %v1855_v28 = vld [vmem:[#allocation2 + $0xe4] ss:$16 sps:$4 sm:$0xff]  }
  0x1d   :  { %586 = vmatpush1.bf16.msra.mxu0 %v1829_v10  ;;  %629 = vmatpush1.bf16.msra.mxu1 %v1830_v11  ;;  %v1857_v29 = vld [vmem:[#allocation2 + $0xec] ss:$16 sps:$4 sm:$0xff]   ;;  %v1859_v30 = vld [vmem:[#allocation2 + $0xe0] ss:$16 sps:$4 sm:$0xff]   ;;  %v1860_v31 = vld [vmem:[#allocation2 + $0xe8] ss:$16 sps:$4 sm:$0xff]  }
  0x1e   :  { %587 = vmatprep.subr.bf16.mxu0 %v1831_v12  ;;  %630 = vmatprep.subr.bf16.mxu1 %v1833_v13  ;;  %v1861_v32 = vld [vmem:[#allocation2 + $0x104] ss:$16 sps:$4 sm:$0xff]   ;;  %v1863_v33 = vld [vmem:[#allocation2 + $0x10c] ss:$16 sps:$4 sm:$0xff]   ;;  %v1865_v34 = vld [vmem:[#allocation2 + $0x100] ss:$16 sps:$4 sm:$0xff]  }
  0x1f   :  { %v1866_v35 = vld [vmem:[#allocation2 + $0x108] ss:$16 sps:$4 sm:$0xff]   ;;  %v1867_v36 = vld [vmem:[#allocation2 + $0x124] ss:$16 sps:$4 sm:$0xff]   ;;  %v1869_v37 = vld [vmem:[#allocation2 + $0x12c] ss:$16 sps:$4 sm:$0xff]  }
  0x20   :  { %v1871_v38 = vld [vmem:[#allocation2 + $0x120] ss:$16 sps:$4 sm:$0xff]   ;;  %v1972_v39 = vmov 1934713408   ;;  %v1872_v42 = vld [vmem:[#allocation2 + $0x128] ss:$16 sps:$4 sm:$0xff]  }
  0x21   :  { %588 = vmatpush1.bf16.msra.mxu0 %v1835_v14  ;;  %631 = vmatpush1.bf16.msra.mxu1 %v1836_v15  ;;  %v83_v40 = vunpack.c.l.s4 %v1972_v39  ;;  %v1873_v43 = vld [vmem:[#allocation2 + $0x144] ss:$16 sps:$4 sm:$0xff]   ;;  %v1875_v44 = vld [vmem:[#allocation2 + $0x14c] ss:$16 sps:$4 sm:$0xff]   ;;  %v1973_v45 = vmov 1983009808  }
  0x22   :  { %589 = vmatprep.subr.bf16.mxu0 %v1837_v16  ;;  %632 = vmatprep.subr.bf16.mxu1 %v1839_v17  ;;  %v137_v46 = vunpack.c.l.s4 %v1973_v45  ;;  %v1877_v47 = vld [vmem:[#allocation2 + $0x140] ss:$16 sps:$4 sm:$0xff]   ;;  %v1878_v48 = vld [vmem:[#allocation2 + $0x148] ss:$16 sps:$4 sm:$0xff]   ;;  %v86_v50 = vshrl.u32 %v85_v41, 7  ;;  %v1974_v8 = vmov 0.0  }
  0x23   :  { %v84_v49 = vunpack.c.0.s8 %v83_v40  ;;  %v1879_v51 = vld [vmem:[#allocation2 + $0x164] ss:$16 sps:$4 sm:$0xff]   ;;  %v1881_v52 = vld [vmem:[#allocation2 + $0x16c] ss:$16 sps:$4 sm:$0xff]   ;;  %v1883_v53 = vld [vmem:[#allocation2 + $0x160] ss:$16 sps:$4 sm:$0xff]  }
  0x24   :  { %v65_v54 = vld [vmem:[%s2299_s0] sm:$0xff]  ;;  %v138_v55 = vunpack.c.0.s8 %v137_v46  ;;  %v1884_v56 = vld [vmem:[#allocation2 + $0x168] ss:$16 sps:$4 sm:$0xff]   ;;  %v1887_v2 = vld [vmem:[#allocation2 + $0x18c] ss:$16 sps:$4 sm:$0xff]   ;;  %vm186_vm0 = vcmask 1046528  }
  0x25   :  { %590 = vmatpush1.bf16.msra.mxu0 %v1841_v18  ;;  %633 = vmatpush1.bf16.msra.mxu1 %v1842_v19  ;;  %v66_v57 = vld [vmem:[%s2299_s0 + $0x8] sm:$0xff]  ;;  %v68_v58 = vrot.slane %v65_v54, 2  ;;  %v70_v59 = vrot.slane %v65_v54, 4  ;;  %v72_v60 = vrot.slane %v65_v54, 6  ;;  %v87_v61 = vsub.s32 %v84_v49, %v86_v50  ;;  %v1885_v62 = vld [vmem:[#allocation2 + $0x184] ss:$16 sps:$4 sm:$0xff]  }
  0x26   :  { %591 = vmatprep.subr.bf16.mxu0 %v1843_v20  ;;  %634 = vmatprep.subr.bf16.mxu1 %v1845_v21  ;;  %v75_v63 = vrot.slane %v66_v57, 2  ;;  %v77_v0 = vrot.slane %v66_v57, 4  ;;  %v79_v1 = vrot.slane %v66_v57, 6  ;;  %v141_v12 = vsub.s32 %v138_v55, %v86_v50  ;;  %v1889_v13 = vld [vmem:[#allocation2 + $0x180] ss:$16 sps:$4 sm:$0xff]   ;;  %v696_v46 = vld [vmem:[%s2301_s2 + $0x88] sm:$0xff] }
  0x27   :  { %v81_v3 = vcombine.low %v65_v54, %v68_v58  ;;  %v90_v4 = vcombine.low %v70_v59, %v72_v60  ;;  %v1518_v5 = vld.sshfl [vmem:[%s2299_s0 + $0x10] sm:$0x11 pattern:$0x73516240]  ;;  %v1890_v14 = vld [vmem:[#allocation2 + $0x188] ss:$16 sps:$4 sm:$0xff]  }
  0x28   :  { %v99_v6 = vcombine.low %v66_v57, %v75_v63  ;;  %v108_v7 = vcombine.low %v77_v0, %v79_v1  ;;  %v125_v9 = vcombine.high %v1518_v5, %v1974_v8  ;;  %v1891_v17 = vld [vmem:[#allocation2 + $0x1a4] ss:$16 sps:$4 sm:$0xff]   ;;  %v1893_v18 = vld [vmem:[#allocation2 + $0x1ac] ss:$16 sps:$4 sm:$0xff]   ;;  %v1908_v49 = vld [vmem:[#allocation2 + $0x1e8] ss:$16 sps:$4 sm:$0xff]  }
  0x29   :  { %592 = vmatpush1.bf16.msra.mxu0 %v1847_v22  ;;  %635 = vmatpush1.bf16.msra.mxu1 %v1848_v23  ;;  %v88_v10 = vrot.slane %v81_v3, %v87_v61  ;;  %v97_v11 = vrot.slane %v90_v4, %v87_v61  ;;  %v178_v23 = vrot.slane %v1518_v5, %v141_v12  ;;  %v1903_v41 = vld [vmem:[#allocation2 + $0x1e4] ss:$16 sps:$4 sm:$0xff]   ;;  %v698_v54 = vld [vmem:[%s2301_s2 + $0x98] sm:$0xff]  ;;  %v684_v1 = vld [vmem:[%s2301_s2 + $0x28] sm:$0xff]  ;;  %vm793_vm1 = vcmask 195584   ;;  %s1978_s20 = smov 112  }
  0x2a   :  { %593 = vmatprep.subr.bf16.mxu0 %v1849_v24  ;;  %636 = vmatprep.subr.bf16.mxu1 %v1851_v25  ;;  %v106_v15 = vrot.slane %v99_v6, %v87_v61  ;;  %v115_v16 = vrot.slane %v108_v7, %v87_v61  ;;  %v185_v24 = vrot.slane %v125_v9, %v141_v12  ;;  %v695_v45 = vld [vmem:[%s2301_s2 + $0x80] sm:$0xff]  ;;  %v681_v58 = vld [vmem:[%s2301_s2 + $0x10] sm:$0xff]  ;;  %v682_v59 = vld [vmem:[%s2301_s2 + $0x18] sm:$0xff]  ;;  %vm875_vm2 = vcmask 130048  }
  0x2b   :  { %v134_v19 = vcombine.low %v88_v10, %v97_v11  ;;  %v1519_v20 = vcombine.high %v88_v10, %v97_v11  ;;  %v1736_v50 = vpack.c.bf16 %v696_v46, %v695_v45  ;;  %v699_v60 = vld [vmem:[%s2301_s2 + $0xa0] sm:$0xff]  ;;  %v700_v61 = vld [vmem:[%s2301_s2 + $0xa8] sm:$0xff]  ;;  %v702_v3 = vld [vmem:[%s2301_s2 + $0xb8] sm:$0xff]  ;;  %vm998_vm3 = vcmask 261120  }
  0x2c   :  { %v135_v21 = vcombine.low %v106_v15, %v115_v16  ;;  %v1520_v22 = vcombine.high %v106_v15, %v115_v16  ;;  %v1744_v63 = vpack.c.bf16 %v700_v61, %v699_v60  ;;  %v683_v0 = vld [vmem:[%s2301_s2 + $0x20] sm:$0xff]  ;;  %v685_v6 = vld [vmem:[%s2301_s2 + $0x30] sm:$0xff]  ;;  %v686_v7 = vld [vmem:[%s2301_s2 + $0x38] sm:$0xff]  ;;  %vm1136_vm4 = vcmask 1041409  }
  0x2d   :  { %594 = vmatpush1.bf16.msra.mxu0 %v1853_v26  ;;  %637 = vmatpush1.bf16.msra.mxu1 %v1854_v27  ;;  %v142_v25 = vrot.slane %v134_v19, %v141_v12  ;;  %v159_v26 = vrot.slane %v1519_v20, %v141_v12  ;;  %v1895_v27 = vld [vmem:[#allocation2 + $0x1a0] ss:$16 sps:$4 sm:$0xff]   ;;  %v1746_v4 = vpack.c.bf16 %v684_v1, %v683_v0  ;;  %v704_v10 = vld [vmem:[%s2301_s2 + $0xc8] sm:$0xff]  ;;  %v706_v16 = vld [vmem:[%s2301_s2 + $0xd8] sm:$0xff]  ;;  %vm1976_vm5 = vmmov 0  }
  0x2e   :  { %595 = vmatprep.subr.bf16.mxu0 %v1855_v28  ;;  %638 = vmatprep.subr.bf16.mxu1 %v1857_v29  ;;  %v1896_v28 = vld [vmem:[#allocation2 + $0x1a8] ss:$16 sps:$4 sm:$0xff]   ;;  %v149_v29 = vrot.slane %v135_v21, %v141_v12  ;;  %v703_v9 = vld [vmem:[%s2301_s2 + $0xc0] sm:$0xff]  ;;  %v1750_v11 = vpack.c.bf16 %v686_v7, %v685_v6  ;;  %v705_v15 = vld [vmem:[%s2301_s2 + $0xd0] sm:$0xff]  ;;  %vm1161_vm10 = vcmask 523264   ;;  %vm1318_vm11 = vcmask 123904  }
  0x2f   :  { %v689_v19 = vld [vmem:[%s2301_s2 + $0x50] sm:$0xff]  ;;  %v690_v20 = vld [vmem:[%s2301_s2 + $0x58] sm:$0xff]  ;;  %v707_v21 = vld [vmem:[%s2301_s2 + $0xe0] sm:$0xff]  ;;  %vm1501_vm14 = vcmask 25600  }
  0x30   :  { %v895_v6 = vld [vmem:[%s2303_s4] sm:$0xff]  ;;  %v896_v7 = vld [vmem:[%s2303_s4 + $0x8] sm:$0xff] }
  0x31   :  { %596 = vmatpush1.bf16.msra.mxu0 %v1859_v30  ;;  %639 = vmatpush1.bf16.msra.mxu1 %v1860_v31  ;;  %v166_v30 = vrot.slane %v1520_v22, %v141_v12  ;;  %v1897_v31 = vld [vmem:[#allocation2 + $0x1c4] ss:$16 sps:$4 sm:$0xff]   ;;  %v1752_v12 = vpack.c.bf16 %v704_v10, %v703_v9  ;;  %v708_v22 = vld [vmem:[%s2301_s2 + $0xe8] sm:$0xff]  ;;  %v1772_v9 = vpack.c.bf16 %v896_v7, %v895_v6 }
  0x32   :  { %597 = vmatprep.subr.bf16.mxu0 %v1861_v32  ;;  %640 = vmatprep.subr.bf16.mxu1 %v1863_v33  ;;  %v1899_v32 = vld [vmem:[#allocation2 + $0x1cc] ss:$16 sps:$4 sm:$0xff]   ;;  %v150_v33 = vcombine.low %v142_v25, %v149_v29  ;;  %v691_v25 = vld [vmem:[%s2301_s2 + $0x60] sm:$0xff] }
  0x33   :  { %v710_v29 = vld [vmem:[%s2301_s2 + $0xf8] sm:$0xff]  ;;  %v987_v10 = vld [vmem:[%s2305_s6] sm:$0xff] }
  0x34   :  { %v187_v39 = vrot.slane %v150_v33, 1 }
  0x35   :  { %598 = vmatpush1.bf16.msra.mxu0 %v1865_v34  ;;  %641 = vmatpush1.bf16.msra.mxu1 %v1866_v35  ;;  %v167_v34 = vcombine.low %v159_v26, %v166_v30  ;;  %v188_v35 = vrot.slane %v178_v23, 1  ;;  %v1758_v23 = vpack.c.bf16 %v690_v20, %v689_v19  ;;  %v692_v26 = vld [vmem:[%s2301_s2 + $0x68] sm:$0xff] }
  0x36   :  { %599 = vmatprep.subr.bf16.mxu0 %v1867_v36  ;;  %642 = vmatprep.subr.bf16.mxu1 %v1869_v37  ;;  %v191_v36 = vrot.slane %v185_v24, 1  ;;  %v1901_v37 = vld [vmem:[#allocation2 + $0x1c0] ss:$16 sps:$4 sm:$0xff]   ;;  %v1760_v24 = vpack.c.bf16 %v708_v22, %v707_v21 }
  0x37   :  { %v190_v40 = vrot.slane %v167_v34, 1  ;;  %v195_v55 = vpack.c.bf16 %v167_v34, %v150_v33 }
  0x39   :  { %600 = vmatpush1.bf16.msra.mxu0 %v1871_v38  ;;  %643 = vmatpush1.bf16.msra.mxu1 %v1872_v42  ;;  %v1902_v38 = vld [vmem:[#allocation2 + $0x1c8] ss:$16 sps:$4 sm:$0xff]   ;;  %v1905_v42 = vld [vmem:[#allocation2 + $0x1ec] ss:$16 sps:$4 sm:$0xff]  }
  0x3a   :  { %601 = vmatprep.subr.bf16.mxu0 %v1873_v43  ;;  %644 = vmatprep.subr.bf16.mxu1 %v1875_v44  ;;  %v189_v43 = vsel %vm186_vm0, %v187_v39, %v188_v35  ;;  %v192_v44 = vsel %vm186_vm0, %v190_v40, %v191_v36 }
  0x3d   :  { %602 = vmatpush1.bf16.msra.mxu0 %v1877_v47  ;;  %645 = vmatpush1.bf16.msra.mxu1 %v1878_v48  ;;  %v196_v47 = vpack.c.bf16 %v192_v44, %v189_v43  ;;  %v1907_v48 = vld [vmem:[#allocation2 + $0x1e0] ss:$16 sps:$4 sm:$0xff]  }
  0x3e   :  { %603 = vmatprep.subr.bf16.mxu0 %v1879_v51  ;;  %646 = vmatprep.subr.bf16.mxu1 %v1881_v52  ;;  %v679_v51 = vld [vmem:[%s2301_s2] sm:$0xff]  ;;  %v680_v52 = vld [vmem:[%s2301_s2 + $0x8] sm:$0xff] }
  0x3f   :  { %613 = vmatprep.mubr.bf16.mxu0 %v196_v47  ;;  %656 = vmatprep.mubr.bf16.mxu1 %v196_v47 }
  0x41   :  { %604 = vmatpush1.bf16.msra.mxu0 %v1883_v53  ;;  %647 = vmatpush1.bf16.msra.mxu1 %v1884_v56  ;;  %v697_v53 = vld [vmem:[%s2301_s2 + $0x90] sm:$0xff]  ;;  %v1738_v56 = vpack.c.bf16 %v680_v52, %v679_v51 }
  0x42   :  { %605 = vmatprep.subr.bf16.mxu0 %v1885_v62  ;;  %648 = vmatprep.subr.bf16.mxu1 %v1887_v2  ;;  %v1740_v57 = vpack.c.bf16 %v698_v54, %v697_v53  ;;  %v1742_v62 = vpack.c.bf16 %v682_v59, %v681_v58  ;;  %v701_v2 = vld [vmem:[%s2301_s2 + $0xb0] sm:$0xff]  ;;  %v790_v54 = vld [vmem:[%s2302_s3] sm:$0xff] }
  0x43   :  { %v1748_v5 = vpack.c.bf16 %v702_v3, %v701_v2 }
  0x45   :  { %606 = vmatpush1.bf16.msra.mxu0 %v1889_v13  ;;  %649 = vmatpush1.bf16.msra.mxu1 %v1890_v14  ;;  %v687_v13 = vld [vmem:[%s2301_s2 + $0x40] sm:$0xff]  ;;  %v688_v14 = vld [vmem:[%s2301_s2 + $0x48] sm:$0xff] }
  0x46   :  { %607 = vmatprep.subr.bf16.mxu0 %v1891_v17  ;;  %650 = vmatprep.subr.bf16.mxu1 %v1893_v18  ;;  %v1754_v17 = vpack.c.bf16 %v688_v14, %v687_v13  ;;  %v1756_v18 = vpack.c.bf16 %v706_v16, %v705_v15 }
  0x49   :  { %608 = vmatpush1.bf16.msra.mxu0 %v1895_v27  ;;  %651 = vmatpush1.bf16.msra.mxu1 %v1896_v28  ;;  %v1762_v27 = vpack.c.bf16 %v692_v26, %v691_v25  ;;  %v709_v28 = vld [vmem:[%s2301_s2 + $0xf0] sm:$0xff] }
  0x4a   :  { %609 = vmatprep.subr.bf16.mxu0 %v1897_v31  ;;  %652 = vmatprep.subr.bf16.mxu1 %v1899_v32  ;;  %v1764_v30 = vpack.c.bf16 %v710_v29, %v709_v28  ;;  %v693_v31 = vld [vmem:[%s2301_s2 + $0x70] sm:$0xff]  ;;  %v694_v32 = vld [vmem:[%s2301_s2 + $0x78] sm:$0xff] }
  0x4b   :  { %v1766_v33 = vpack.c.bf16 %v694_v32, %v693_v31 }
  0x4d   :  { %610 = vmatpush1.bf16.msra.mxu0 %v1901_v37  ;;  %653 = vmatpush1.bf16.msra.mxu1 %v1902_v38 }
  0x4e   :  { %611 = vmatprep.subr.bf16.mxu0 %v1903_v41  ;;  %654 = vmatprep.subr.bf16.mxu1 %v1905_v42 }
  0x51   :  { %612 = vmatpush1.bf16.msra.mxu0 %v1907_v48  ;;  %655 = vmatpush1.bf16.msra.mxu1 %v1908_v49 }
  0x52   :  { %1737 = vmatprep.subr.bf16.mxu0 %v1736_v50 }
  0x54   :  { %614 = vmatmul.mubr.bf16.vlgmr.msra.gmra.mrb[0].mxu0 %v195_v55  ;;  %657 = vmatmul.mubr.bf16.vlgmr.msra.gmra.mrb[0].mxu1 %v195_v55  ;;  %v791_v55 = vld [vmem:[%s2302_s3 + $0x8] sm:$0xff] }
  0x55   :  { %1739 = vmatpush3.bf16.msra.mxu0 %v1738_v56  ;;  %v1768_v56 = vpack.c.bf16 %v791_v55, %v790_v54  ;;  %v1153_v54 = vld [vmem:[%s2307_s8 + $0x38] sm:$0xff] }
  0x56   :  { %1741 = vmatprep.subr.bf16.mxu0 %v1740_v57  ;;  %v792_v57 = vld [vmem:[%s2302_s3 + $0x10] sm:$0xff] }
  0x57   :  { %1769 = vmatprep.subr.bf16.mxu1 %v1768_v56 }
  0x58   :  { %1771 = vmatpush3.bf16.msra.mxu1 %v1768_v56  ;;  %v1590_v56 = vld [vmem:[%s2306_s7] ss:$0 sm:$0xff] }
  0x59   :  { %1743 = vmatpush3.bf16.msra.mxu0 %v1742_v62  ;;  %1675 = vmatprep.subr.mxu1 %v792_v57 }
  0x5a   :  { %1745 = vmatprep.subr.bf16.mxu0 %v1744_v63 }
  0x5c   :  { %1676 = vmatpush3.msra.mxu1 %v792_v57 }
  0x5d   :  { %1747 = vmatpush3.bf16.msra.mxu0 %v1746_v4  ;;  %1773 = vmatprep.subr.bf16.mxu1 %v1772_v9 }
  0x5e   :  { %1749 = vmatprep.subr.bf16.mxu0 %v1748_v5 }
  0x61   :  { %1751 = vmatpush3.bf16.msra.mxu0 %v1750_v11  ;;  %v988_v11 = vld [vmem:[%s2305_s6 + $0x8] sm:$0xff] }
  0x62   :  { %1753 = vmatprep.subr.bf16.mxu0 %v1752_v12  ;;  %v1776_v12 = vpack.c.bf16 %v988_v11, %v987_v10 }
  0x65   :  { %1755 = vmatpush3.bf16.msra.mxu0 %v1754_v17 }
  0x66   :  { %1757 = vmatprep.subr.bf16.mxu0 %v1756_v18 }
  0x69   :  { %1759 = vmatpush3.bf16.msra.mxu0 %v1758_v23 }
  0x6a   :  { %1761 = vmatprep.subr.bf16.mxu0 %v1760_v24 }
  0x6d   :  { %1763 = vmatpush3.bf16.msra.mxu0 %v1762_v27 }
  0x6e   :  { %1765 = vmatprep.subr.bf16.mxu0 %v1764_v30 }
  0x71   :  { %1767 = vmatpush3.bf16.msra.mxu0 %v1766_v33  ;;  %v989_v33 = vld [vmem:[%s2305_s6 + $0x10] sm:$0xff] }
 0x127   :  { %v615_v34 = vpop.f32.mrb[0].mxu0  ;;  %v658_v35 = vpop.f32.mrb[0].mxu1 }
 0x128   :  { %v667_v36 = vmul.f32 %v615_v34, %v615_v34  ;;  %v671_v37 = vmul.f32 %v658_v35, %v658_v35  ;;  %v617_v38 = vpop.f32.mrb[1].mxu0  ;;  %v660_v39 = vpop.f32.mrb[1].mxu1  ;;  %v990_v34 = vld [vmem:[%s2305_s6 + $0x18] sm:$0xff] }
 0x129   :  { %v668_v40 = vmul.f32 %v617_v38, %v617_v38  ;;  %v672_v41 = vmul.f32 %v660_v39, %v660_v39  ;;  %v619_v42 = vpop.f32.mrb[2].mxu0  ;;  %v662_v43 = vpop.f32.mrb[2].mxu1  ;;  %v1780_v35 = vpack.c.bf16 %v990_v34, %v989_v33 }
 0x12a   :  { %v675_v44 = vadd.f32 %v671_v37, %v667_v36  ;;  %v669_v45 = vmul.f32 %v619_v42, %v619_v42  ;;  %v673_v46 = vmul.f32 %v662_v43, %v662_v43  ;;  %v621_v47 = vpop.f32.mrb[3].mxu0  ;;  %v664_v48 = vpop.f32.mrb[3].mxu1  ;;  %v1587_v36 = vld [vmem:[%s2304_s5] ss:$0 sm:$0xff] }
 0x12b   :  { %v676_v49 = vadd.f32 %v672_v41, %v668_v40  ;;  %v670_v50 = vmul.f32 %v621_v47, %v621_v47  ;;  %v674_v51 = vmul.f32 %v664_v48, %v664_v48  ;;  %v1146_v43 = vld [vmem:[%s2307_s8] sm:$0xff]  ;;  %v1149_v48 = vld [vmem:[%s2307_s8 + $0x18] sm:$0xff] }
 0x12c   :  { %v677_v52 = vadd.f32 %v673_v46, %v669_v45  ;;  %v1148_v45 = vld [vmem:[%s2307_s8 + $0x10] sm:$0xff]  ;;  %v1975_v46 = vmov 0.0|0.0  }
 0x12d   :  { %v678_v53 = vadd.f32 %v674_v51, %v670_v50  ;;  %775 = vmatprep.mubr.f32.mxu0 %v676_v49  ;;  %1796 = vmatprep.subr.bf16.mxu0 %v1975_v46  ;;  %v1788_v49 = vpack.c.bf16 %v1149_v48, %v1148_v45  ;;  %v1150_v50 = vld [vmem:[%s2307_s8 + $0x20] sm:$0xff]  ;;  %v1151_v51 = vld [vmem:[%s2307_s8 + $0x28] sm:$0xff] }
 0x12e   :  { %776 = vmatmul.mubr.f32.vlgmr.msra.gmra.mrb[4].mxu0 %v675_v44  ;;  %v1147_v44 = vld [vmem:[%s2307_s8 + $0x8] sm:$0xff] }
 0x12f   :  { %780 = vmatprep.mubr.f32.mxu0 %v678_v53  ;;  %v1785_v47 = vpack.c.bf16 %v1147_v44, %v1146_v43  ;;  %v1152_v53 = vld [vmem:[%s2307_s8 + $0x30] sm:$0xff] }
 0x130   :  { %v1794_v55 = vpack.c.bf16 %v1153_v54, %v1152_v53 }
 0x132   :  { %781 = vmatmul.mubr.f32.gmra.mrb[6].mxu0 %v677_v52  ;;  %v1791_v52 = vpack.c.bf16 %v1151_v51, %v1150_v50 }
 0x133   :  { %1721 = vmatprep.mubr.msk.f32.mxu0 %vm1976_vm5, %v1974_v8 }
 0x201   :  { %v1633_v58 = vpop.f32.mrb[4].mxu0 }
 0x202   :  { %v1634_v59 = vpop.f32.mrb[5].mxu0 }
 0x203   :  { %v1635_v60 = vadd.f32 %v1634_v59, %v1633_v58 }
 0x205   :  { %v778_v61 = vadd.f32 1e-06, %v1635_v60  ;;  %v1636_v62 = vpop.f32.mrb[6].mxu0 }
 0x206   :  { %v1637_v63 = vpop.f32.mrb[7].mxu0 }
 0x207   :  { %1909 = vlog2.f32 %v778_v61  ;;  %v1638_v0 = vadd.f32 %v1637_v63, %v1636_v62 }
 0x209   :  { %v783_v1 = vadd.f32 1e-06, %v1638_v0 }
 0x20b   :  { %1911 = vlog2.f32 %v783_v1 }
 0x211   :  { %v1910_v2 = vpop.eup %1909 }
 0x212   :  { %v787_v3 = vmul.f32 0.6931472, %v1910_v2 }
 0x214   :  { %1677 = vmatprep.mubr.msk.f32.mxu1 %vm793_vm1, %v787_v3 }
 0x215   :  { %v1912_v4 = vpop.eup %1911 }
 0x216   :  { %v789_v5 = vmul.f32 0.6931472, %v1912_v4 }
 0x218   :  { %1678 = vmatmul.mubr.msk.f32.vlgmr.msra.gmra.mrb[4].mxu1 %vm793_vm1, %v789_v5 }
 0x219   :  { %1775 = vmatpush3.bf16.msra.mxu1 %v1772_v9 }
 0x21a   :  { %1777 = vmatprep.subr.bf16.mxu1 %v1776_v12 }
 0x2eb   :  { %v1679_v13 = vpop.f32.mrb[4].mxu1 }
 0x2ec   :  { %v883_v14 = vsel %vm875_vm2, %v1679_v13, 0.0  ;;  %v866_v15 = vpop.f32.mrb[5].mxu1 }
 0x2ed   :  { %v884_v16 = vrot.slane %v883_v14, 4  ;;  %v876_v17 = vsel %vm875_vm2, %v866_v15, 0.0 }
 0x2ee   :  { %v877_v18 = vrot.slane %v876_v17, 4 }
 0x2ef   :  { %v885_v19 = vadd.f32 %v884_v16, %v883_v14 }
 0x2f0   :  { %v878_v20 = vadd.f32 %v877_v18, %v876_v17 }
 0x2f1   :  { %v886_v21 = vrot.slane %v885_v19, 2 }
 0x2f2   :  { %v879_v22 = vrot.slane %v878_v20, 2 }
 0x2f3   :  { %v887_v23 = vadd.f32 %v886_v21, %v885_v19 }
 0x2f4   :  { %v880_v24 = vadd.f32 %v879_v22, %v878_v20 }
 0x2f5   :  { %v888_v25 = vrot.slane %v887_v23, 1 }
 0x2f6   :  { %v881_v26 = vrot.slane %v880_v24, 1 }
 0x2f7   :  { %v889_v27 = vadd.f32 %v888_v25, %v887_v23 }
 0x2f8   :  { %v882_v28 = vadd.f32 %v881_v26, %v880_v24 }
 0x2f9   :  { %v892_v29 = vmul.f32 0.125, %v889_v27 }
 0x2fa   :  { %v891_v30 = vmul.f32 0.125, %v882_v28 }
 0x2fb   :  { %v894_v32 = vsub.f32 %v1679_v13, %v892_v29 }
 0x2fc   :  { %v893_v31 = vsub.f32 %v866_v15, %v891_v30 }
 0x2fe   :  { %1684 = vmatprep.mubr.msk.f32.mxu1 %vm875_vm2, %v893_v31 }
 0x2ff   :  { %1685 = vmatmul.mubr.msk.f32.vlgmr.msra.gmra.mrb[6].mxu1 %vm875_vm2, %v894_v32 }
 0x300   :  { %1779 = vmatpush3.bf16.msra.mxu1 %v1776_v12 }
 0x301   :  { %1781 = vmatprep.subr.bf16.mxu1 %v1780_v35 }
 0x304   :  { %1783 = vmatpush3.bf16.msra.mxu1 %v1780_v35 }
 0x305   :  { %1784 = vmatprep.subr.bf16.mxu1 %v1975_v46 }
 0x3d2   :  { %v1686_v37 = vpop.f32.mrb[6].mxu1 }
 0x3d3   :  { %v982_v38 = vadd.f32 %v1686_v37, %v1587_v36  ;;  %v976_v39 = vpop.f32.mrb[7].mxu1 }
 0x3d4   :  { %v977_v40 = vadd.f32 %v1587_v36, %v976_v39  ;;  %v1235_v39 = vld [vmem:[%s2309_s10] sm:$0xff] }
 0x3d5   :  { %v986_v42 = vmax.f32 %v982_v38, 0.0 }
 0x3d6   :  { %v985_v41 = vmax.f32 %v977_v40, 0.0  ;;  %v1236_v40 = vld [vmem:[%s2309_s10 + $0x8] sm:$0xff]  ;;  %s1977_s10 = smov 32  }
 0x3d8   :  { %1695 = vmatprep.mubr.msk.f32.mxu1 %vm998_vm3, %v985_v41  ;;  %v1797_v41 = vpack.c.bf16 %v1236_v40, %v1235_v39 }
 0x3d9   :  { %1696 = vmatmul.mubr.msk.f32.vlgmr.msra.gmra.mrb[8].mxu1 %vm998_vm3, %v986_v42 }
 0x3da   :  { %1786 = vmatpush3.bf16.msra.mxu1 %v1785_v47  ;;  %1714 = vmatprep.mubr.msk.f32.mxu1 %vm1976_vm5, %v1974_v8 }
 0x3db   :  { %1787 = vmatprep.subr.bf16.mxu1 %v1975_v46  ;;  %1798 = vmatpush3.bf16.msra.mxu0 %v1797_v41 }
 0x3dc   :  { %1731 = vmatprep.subr.mxu0 %v1974_v8 }
 0x3de   :  { %1789 = vmatpush3.bf16.msra.mxu1 %v1788_v49 }
 0x3df   :  { %1790 = vmatprep.subr.bf16.mxu1 %v1975_v46 }
 0x3e2   :  { %1792 = vmatpush3.bf16.msra.mxu1 %v1791_v52 }
 0x3e3   :  { %1793 = vmatprep.subr.bf16.mxu1 %v1975_v46 }
 0x3e6   :  { %1795 = vmatpush3.bf16.msra.mxu1 %v1794_v55  ;;  %v1593_v55 = vld [vmem:[%s2308_s9] ss:$0 sm:$0xff] }
 0x3e7   :  { %1799 = vmatprep.subr.bf16.mxu1 %v1975_v46 }
 0x4ac   :  { %v1697_v57 = vpop.f32.mrb[8].mxu1 }
 0x4ad   :  { %v1077_v58 = vadd.f32 %v1697_v57, %v1590_v56  ;;  %v1071_v59 = vpop.f32.mrb[9].mxu1 }
 0x4ae   :  { %v1072_v60 = vadd.f32 %v1590_v56, %v1071_v59  ;;  %v1595_v59 = vld [vmem:[%s2310_s11] ss:$0 sm:$0xff] }
 0x4af   :  { %v1081_v61 = vmax.f32 %v1077_v58, 0.0 }
 0x4b0   :  { %v1080_v62 = vmax.f32 %v1072_v60, 0.0 }
 0x4b1   :  { %v1089_v63 = vsel %vm998_vm3, %v1081_v61, 0.0 }
 0x4b2   :  { %v1090_v0 = vrot.slane %v1089_v63, 4  ;;  %v1082_v1 = vsel %vm998_vm3, %v1080_v62, 0.0 }
 0x4b3   :  { %v1083_v2 = vrot.slane %v1082_v1, 4 }
 0x4b4   :  { %v1091_v3 = vadd.f32 %v1090_v0, %v1089_v63 }
 0x4b5   :  { %v1084_v4 = vadd.f32 %v1083_v2, %v1082_v1  ;;  %v1333_v1 = vld [vmem:[%s2311_s12] sm:$0xff] }
 0x4b6   :  { %v1092_v5 = vrot.slane %v1091_v3, 2 }
 0x4b7   :  { %v1085_v6 = vrot.slane %v1084_v4, 2 }
 0x4b8   :  { %v1093_v7 = vadd.f32 %v1092_v5, %v1091_v3 }
 0x4b9   :  { %v1086_v9 = vadd.f32 %v1085_v6, %v1084_v4 }
 0x4ba   :  { %v1094_v10 = vrot.slane %v1093_v7, 1 }
 0x4bb   :  { %v1087_v11 = vrot.slane %v1086_v9, 1 }
 0x4bc   :  { %v1095_v12 = vadd.f32 %v1094_v10, %v1093_v7 }
 0x4bd   :  { %v1088_v13 = vadd.f32 %v1087_v11, %v1086_v9 }
 0x4be   :  { %v1097_v14 = vmul.f32 0.125, %v1095_v12 }
 0x4bf   :  { %v1096_v15 = vmul.f32 0.125, %v1088_v13 }
 0x4c0   :  { %v1099_v16 = vsub.f32 %v1081_v61, %v1097_v14 }
 0x4c1   :  { %v1098_v17 = vsub.f32 %v1080_v62, %v1096_v15  ;;  %v1137_v18 = vsel %vm1136_vm4, %v1097_v14, %v1096_v15  ;;  %v1412_v14 = vld [vmem:[%s2312_s13] sm:$0xf]  ;;  %s1979_s13 = smov [#allocation5]  }
 0x4c2   :  { %v1101_v19 = vmul.f32 %v1099_v16, %v1099_v16  ;;  %s1509_s3 = sshll.u32 %s1979_s13, 4  ;;  %s1510_s3 = int_to_ptr.vmem [resolvable:$true] %s1509_s3 }
 0x4c3   :  { %v1100_v20 = vmul.f32 %v1098_v17, %v1098_v17  ;;  %s1943_s22 = scalar_lea.vmem %s1510_s3, 32  ;;  %p1948_p9 = scmp.lt.s32.totalorder %s1510_s3, %s1510_s3 }
 0x4c4   :  { %v1109_v21 = vsel %vm998_vm3, %v1101_v19, 0.0  ;;  %p1944_p8 = scmp.ne.s32.totalorder %s1510_s3, %s1943_s22  ;;  %p1949_p10 = scmp.lt.s32.totalorder %s1943_s22, %s1943_s22 }
 0x4c5   :  { %v1110_v22 = vrot.slane %v1109_v21, 4  ;;  %v1102_v23 = vsel %vm998_vm3, %v1100_v20, 0.0 }
 0x4c6   :  { %v1103_v24 = vrot.slane %v1102_v23, 4  ;;  %p1950_p11 = por %p1949_p10, %p1948_p9 }
 0x4c7   :  { %v1111_v25 = vadd.f32 %v1110_v22, %v1109_v21 }
 0x4c8   :  { %v1104_v26 = vadd.f32 %v1103_v24, %v1102_v23  ;;  %v1600_v24 = vld [vmem:[%s2313_s14] ss:$0 sm:$0xff]  ;;  %p1951_p12 = pnand %p1950_p11, %p1944_p8 }
 0x4c9   :  { %v1112_v27 = vrot.slane %v1111_v25, 2 }
 0x4ca   :  { %v1105_v28 = vrot.slane %v1104_v26, 2 }
 0x4cb   :  { %v1113_v29 = vadd.f32 %v1112_v27, %v1111_v25 }
 0x4cc   :  { %v1106_v30 = vadd.f32 %v1105_v28, %v1104_v26 }
 0x4cd   :  { %v1114_v31 = vrot.slane %v1113_v29, 1 }
 0x4ce   :  { %v1107_v32 = vrot.slane %v1106_v30, 1 }
 0x4cf   :  { %v1115_v33 = vadd.f32 %v1114_v31, %v1113_v29 }
 0x4d0   :  { %v1108_v34 = vadd.f32 %v1107_v32, %v1106_v30 }
 0x4d1   :  { %v1117_v35 = vmul.f32 0.125, %v1115_v33 }
 0x4d2   :  { %v1116_v36 = vmul.f32 0.125, %v1108_v34 }
 0x4d3   :  { %v1119_v37 = vadd.f32 1e-06, %v1117_v35 }
 0x4d4   :  { %v1118_v38 = vadd.f32 1e-06, %v1116_v36 }
 0x4d5   :  { %1913 = vrsqrt.f32 %v1119_v37  ;;  %vm1129_vm6 = vcmp.eq.f32.partialorder %v1119_v37, inf  ;;  %v1132_v46 = vand.u32 2147483648, %v1119_v37  ;;  %vm1131_vm8 = vcmp.eq.f32.partialorder %v1119_v37, 0.0 }
 0x4d6   :  { %1915 = vrsqrt.f32 %v1118_v38  ;;  %vm1122_vm7 = vcmp.eq.f32.partialorder %v1118_v38, inf  ;;  %v1125_v47 = vand.u32 2147483648, %v1118_v38  ;;  %vm1124_vm9 = vcmp.eq.f32.partialorder %v1118_v38, 0.0 }
 0x4df   :  { %v1914_v42 = vpop.eup %1913 }
 0x4e0   :  { %v1916_v43 = vpop.eup %1915  ;;  %v1128_v44 = vmul.f32 %v1914_v42, %v1119_v37 }
 0x4e1   :  { %v1121_v45 = vmul.f32 %v1916_v43, %v1118_v38 }
 0x4e2   :  { %v1130_v48 = vsel %vm1129_vm6, %v1119_v37, %v1128_v44 }
 0x4e3   :  { %v1123_v49 = vsel %vm1122_vm7, %v1118_v38, %v1121_v45  ;;  %v1133_v50 = vsel %vm1131_vm8, %v1132_v46, %v1130_v48 }
 0x4e4   :  { %v1126_v51 = vsel %vm1124_vm9, %v1125_v47, %v1123_v49 }
 0x4e5   :  { %v1141_v52 = vsel %vm1136_vm4, %v1133_v50, %v1126_v51 }
 0x4e6   :  { %1142 = vrot.lane.b32.xlu0 %v1141_v52, %s1977_s10 }
 0x558   :  { %v1143_v53 = vpop.permute.xlu0 %1142 }
 0x559   :  { %v1145_v54 = vsel %vm998_vm3, %v1137_v18, %v1143_v53 }
 0x55a   :  { %1715 = vmatmul.mubr.msk.f32.vlgmr.msra.gmra.mrb[10].mxu1 %vm1161_vm10, %v1145_v54 }
 0x55b   :  { %1728 = vmatprep.mubr.msk.f32.mxu1 %vm1976_vm5, %v1974_v8 }
 0x62d   :  { %v1231_v56 = vpop.f32.mrb[10].mxu1 }
 0x62e   :  { %v1232_v57 = vadd.f32 %v1593_v55, %v1231_v56  ;;  %v1716_v58 = vpop.f32.mrb[11].mxu1 }
 0x630   :  { %1722 = vmatmul.mubr.msk.f32.vlgmr.msra.gmra.mrb[8].mxu0 %vm875_vm2, %v1232_v57 }
 0x631   :  { %1733 = vmatprep.mubr.msk.f32.mxu0 %vm1976_vm5, %v1974_v8  ;;  %v1334_v8 = vld [vmem:[%s2311_s12 + $0x8] sm:$0xff]  ;;  %1732 = vmatpush3.xpose.msk.msra.mxu0 %vm875_vm2, %v1412_v14 }
 0x632   :  { %v1800_v2 = vpack.c.bf16 %v1334_v8, %v1333_v1 }
 0x634   :  { %1801 = vmatpush3.bf16.msra.mxu1 %v1800_v2 }
 0x703   :  { %v1313_v60 = vpop.f32.mrb[8].mxu0 }
 0x704   :  { %v1314_v61 = vadd.f32 %v1595_v59, %v1313_v60  ;;  %v1723_v62 = vpop.f32.mrb[9].mxu0 }
 0x706   :  { %v1317_v63 = vmul.f32 %v1314_v61, %v1314_v61 }
 0x708   :  { %v1319_v0 = vsel %vm1318_vm11, %v1317_v63, 0.0 }
 0x709   :  { %1320 = vadd.xlane.f32.xlu0 %v1319_v0 }
 0x796   :  { %v1321_v3 = vpop.xlane.xlu0 %1320 }
 0x797   :  { %1917 = vrsqrt.f32 %v1321_v3  ;;  %vm1324_vm12 = vcmp.eq.f32.partialorder %v1321_v3, inf  ;;  %v1327_v6 = vand.u32 2147483648, %v1321_v3  ;;  %vm1326_vm13 = vcmp.eq.f32.partialorder %v1321_v3, 0.0 }
 0x7a1   :  { %v1918_v4 = vpop.eup %1917 }
 0x7a2   :  { %v1323_v5 = vmul.f32 %v1918_v4, %v1321_v3 }
 0x7a4   :  { %v1325_v7 = vsel %vm1324_vm12, %v1321_v3, %v1323_v5 }
 0x7a5   :  { %v1328_v9 = vsel %vm1326_vm13, %v1327_v6, %v1325_v7 }
 0x7a6   :  { %v1329_v10 = vadd.f32 1e-08, %v1328_v9 }
 0x7a8   :  { %1919 = vrcp.f32 %v1329_v10 }
 0x7b2   :  { %v1920_v11 = vpop.eup %1919 }
 0x7b3   :  { %v1331_v12 = vmul.f32 4.0, %v1920_v11 }
 0x7b5   :  { %v1332_v13 = vmul.f32 %v1331_v12, %v1314_v61 }
 0x7b7   :  { %1729 = vmatmul.mubr.msk.f32.vlgmr.msra.gmra.mrb[12].mxu1 %vm875_vm2, %v1332_v13 }
 0x88a   :  { %v1404_v15 = vpop.f32.mrb[12].mxu1 }
 0x88b   :  { %1414 = vrot.lane.b32.xlu1 %v1404_v15, %s1978_s20  ;;  %v1730_v16 = vpop.f32.mrb[13].mxu1  ;;  %v1408_v17 = vmul.f32 %v1404_v15, %v1332_v13 }
 0x88d   :  { %v1409_v18 = vsel %vm1318_vm11, %v1408_v17, 0.0 }
 0x8af   :  { %1410 = vadd.xlane.f32.xlu1 %v1409_v18 }
 0x8fd   :  { %v1415_v19 = vpop.permute.xlu1 %1414 }
 0x8fe   :  { %1734 = vmatmul.mubr.msk.f32.vlgmr.msra.gmra.mrb[10].mxu0 %vm875_vm2, %v1415_v19 }
 0x93c   :  { %v1411_v23 = vpop.xlane.xlu1 %1410 }
 0x9d1   :  { %v1487_v20 = vpop.f32.mrb[10].mxu0 }
 0x9d2   :  { %v1491_v21 = vmul.f32 2.0, %v1487_v20  ;;  %v1735_v22 = vpop.f32.mrb[11].mxu0 }
 0x9d4   :  { %v1492_v25 = vadd.f32 %v1491_v21, %v1411_v23 }
 0x9d6   :  { %v1500_v26 = vadd.f32 %v1600_v24, %v1492_v25 }
 0x9d8   :  { %1502 = vst.msk [vmem:[#allocation5] sm:$0x3] %vm1501_vm14, %v1500_v26 }
 0x9d9   :  { %1954 = shalt.err (!%p1951_p12)
}
 0x9da   :  { %s1955_s25 = scalar_lea.hbm %s2314_s15, 32 }
 0x9db   :  { %p1956_p13 = scmp.ne.s32.totalorder %s2314_s15, %s1955_s25  ;;  %p1959_p0 = scmp.lt.u32.totalorder %s1955_s25, %s2314_s15 }
 0x9dd   :  { %p1961_p1 = pnand %p1959_p0, %p1956_p13 }
 0x9df   :  { %1964 = shalt.err (!%p1961_p1)
}
 0x9e0   :  { %1512 = dma.vmem_to_hbm [thread:$0]  %s1510_s3, 32, %s2314_s15, [#allocation4]  }
 0x9e1   :  { %1967 = dma.done.wait [#allocation4], 32  }
 0x9e2   :  { %1968 = vsyncadd [#allocation4], 4294967264 }
 0x9e3   :  { %1516 = vsyncpa [#allocation3], 1 }
 0x9e4   :  { %1517 = vsyncpa [#allocation4], 1 }

</bundles_post_ra>
